<compile_context>
chip_gen: v7x
topology: tpu7x:2x2x1
jax: 0.10.0
libtpu: 0.0.40
codegen_flags: <defaults>
</compile_context>

<pallas_src>
import functools
import math

import jax
import jax.numpy as jnp
from jax.experimental import pallas as pl
from jax.experimental.pallas import tpu as pltpu

LANES = 128
SUBLANES = 8
# ~2 MiB per grid step: 2x(in) + 2x(out) [+ 2x(noise)] double buffers stay
# well under the 16 MiB v5e default scoped-VMEM, while amortizing the
# ~0.35 us per-step pipeline overhead on v6e/v7x.
TARGET_BLOCK_BYTES = 2 * 1024 * 1024


def _choose_width(n):
    """Widest lane-dense slab width (multiple of 128) that divides n, else 128."""
    for w in (2048, 1024, 512, 256, 128):
        if n % w == 0:
            return w
    return LANES


# ----------------------------------------------------------------------------
# Kernels (operate on lane-dense (block_rows, W) f32 tiles)
# ----------------------------------------------------------------------------
def _bias_quant_kernel(scale_ref, x_ref, out_ref, *,
                       bias_input, lo, hi, int_flag):
    """out = round(clamp(x / scale, lo, hi)) [* scale]."""
    s = scale_ref[0] * jnp.float32(bias_input)          # scalar (SMEM)
    x_int = jnp.round(jnp.clip(x_ref[...] / s, jnp.float32(lo), jnp.float32(hi)))
    out_ref[...] = x_int if int_flag else x_int * s


def _bias_quant_noise_kernel(scale_ref, x_ref, noise_ref, out_ref, *,
                             bias_input, lo, hi, int_flag, factor):
    """Noise path: x_int += clip(randn,-3,3) * thd_pos * noise_scale * sqrt(rows)."""
    s = scale_ref[0] * jnp.float32(bias_input)
    x_int = jnp.round(jnp.clip(x_ref[...] / s, jnp.float32(lo), jnp.float32(hi)))
    x_int = x_int + noise_ref[...] * jnp.float32(factor)   # noise pre-clipped
    out_ref[...] = x_int if int_flag else x_int * s


# ----------------------------------------------------------------------------
# Module wrapper
# ----------------------------------------------------------------------------
class BiasQuantizerRows:
    def __init__(self, bit=None, rows=1, bias_input=1, all_positive=False,
                 symmetric=True, int_flag=False, noise_scale=0):
        self.bit = bit
        self.rows = rows
        self.bias_input = bias_input
        if all_positive:
            assert not symmetric, "Positive quantization cannot be symmetric"
            self.thd_neg = 0
            self.thd_pos = 2 ** bit - 1
        elif symmetric:
            self.thd_neg = -2 ** (bit - 1) + 1
            self.thd_pos = 2 ** (bit - 1) - 1
        # (matches original: thd_neg/thd_pos undefined otherwise)
        self.noise_scale = noise_scale
        self.int_flag = int_flag

    def __call__(self, x, scale, seed=0):
        """x: float bias array of any shape (typically (C,) or stacked (N, C)).
        scale: python float or 0-d array.  seed: int PRNG seed for noise."""
        x = jnp.asarray(x, jnp.float32)
        orig_shape = x.shape
        n = int(x.size)

        # --- pack into a lane-dense (rows, W) slab --------------------------
        width = _choose_width(n)
        pad = (-n) % width
        n_padded = n + pad
        rows = n_padded // width

        x_flat = x.reshape(n)
        if pad:
            x_flat = jnp.pad(x_flat, (0, pad))
        x2d = x_flat.reshape(rows, width)

        # Block rows: multiple of 8 targeting ~TARGET_BLOCK_BYTES per step;
        # small slabs use a single full-array block (no (8,128) constraint
        # when the block equals the array dims).
        target_rows = max(SUBLANES,
                          (TARGET_BLOCK_BYTES // (width * 4)) // SUBLANES * SUBLANES)
        if rows <= target_rows:
            block_rows = rows
            grid = (1,)
        else:
            block_rows = target_rows
            grid = (pl.cdiv(rows, block_rows),)   # ragged last block handled by Pallas

        scale_arr = jnp.asarray(scale, jnp.float32).reshape(1)
        lo = float(self.thd_neg * self.rows)
        hi = float(self.thd_pos * self.rows)
        common = dict(bias_input=float(self.bias_input), lo=lo, hi=hi,
                      int_flag=bool(self.int_flag))

        tile_spec = pl.BlockSpec((block_rows, width), lambda i: (i, 0))
        cparams = pltpu.CompilerParams(dimension_semantics=("parallel",))
        out_shape = jax.ShapeDtypeStruct((rows, width), jnp.float32)
        # Only alias when padding created a fresh intermediate buffer
        # (safe to donate); on the aligned fast path keep the user's array.
        aliases = {1: 0} if pad else {}

        if self.noise_scale == 0:
            out2d = pl.pallas_call(
                functools.partial(_bias_quant_kernel, **common),
                out_shape=out_shape,
                grid=grid,
                in_specs=[pl.BlockSpec(memory_space=pltpu.SMEM),   # scale
                          tile_spec],                              # x (VMEM tiles)
                out_specs=tile_spec,
                input_output_aliases=aliases,
                compiler_params=cparams,
            )(scale_arr, x2d)
        else:
            # factor = thd_pos * noise_scale * sqrt(rows), baked as a constant
            factor = float(self.thd_pos) * float(self.noise_scale) * math.sqrt(self.rows)
            key = jax.random.PRNGKey(int(seed))
            noise = jnp.clip(jax.random.normal(key, (rows, width), jnp.float32),
                             -3.0, 3.0)
            out2d = pl.pallas_call(
                functools.partial(_bias_quant_noise_kernel, factor=factor, **common),
                out_shape=out_shape,
                grid=grid,
                in_specs=[pl.BlockSpec(memory_space=pltpu.SMEM),   # scale
                          tile_spec,                               # x
                          tile_spec],                              # noise
                out_specs=tile_spec,
                input_output_aliases=aliases,
                compiler_params=cparams,
            )(scale_arr, x2d, noise)

        if pad:
            out = out2d.reshape(n_padded)[:n].reshape(orig_shape)
        else:
            out = out2d.reshape(orig_shape)

        if self.int_flag:
            eff_scale = jnp.asarray(scale, jnp.float32) * jnp.float32(self.bias_input)
            return out, eff_scale     # scale.detach() -> just the value
        return out


# ----------------------------------------------------------------------------
# Pure-JAX reference (sanity check of the no-noise forward value)
# ----------------------------------------------------------------------------
def _ref_forward(x, scale, *, bit, rows, bias_input, int_flag):
    thd_neg = -2 ** (bit - 1) + 1
    thd_pos = 2 ** (bit - 1) - 1
    s = scale * bias_input
    x_int = jnp.round(jnp.clip(x / s, thd_neg * rows, thd_pos * rows))
    return x_int if int_flag else x_int * s


if __name__ == "__main__":
    key = jax.random.PRNGKey(0)
    C = 32                                        # bias / hidden size
    x = jax.random.normal(key, (C,), dtype=jnp.float32) * 0.5
    scale = 0.01

    # ---- no-noise, float output ---------------------------------------------
    quant = BiasQuantizerRows(bit=8, rows=4, bias_input=2,
                              symmetric=True, int_flag=False, noise_scale=0)
    out = jax.block_until_ready(quant(x, scale))
    ref = _ref_forward(x, scale, bit=8, rows=4, bias_input=2, int_flag=False)
    assert out.shape == (C,) and out.dtype == jnp.float32
    assert jnp.allclose(out, ref, atol=1e-6, rtol=1e-6), "mismatch vs reference"

    # ---- int_flag path -------------------------------------------------------
    quant_int = BiasQuantizerRows(bit=8, rows=4, bias_input=2,
                                  symmetric=True, int_flag=True, noise_scale=0)
    x_int, eff_scale = quant_int(x, scale)
    jax.block_until_ready(x_int)
    ref_int = _ref_forward(x, scale, bit=8, rows=4, bias_input=2, int_flag=True)
    assert jnp.allclose(x_int, ref_int, atol=1e-6, rtol=1e-6)
    assert jnp.allclose(eff_scale, jnp.float32(scale * 2))

    # ---- batched biases (stacked into one slab, single launch) ---------------
    xb = jax.random.normal(jax.random.PRNGKey(1), (4, 257), dtype=jnp.float32) * 0.3
    outb = jax.block_until_ready(quant(xb, scale))
    refb = _ref_forward(xb, scale, bit=8, rows=4, bias_input=2, int_flag=False)
    assert outb.shape == (4, 257)
    assert jnp.allclose(outb, refb, atol=1e-6, rtol=1e-6)

    # ---- aligned fast path (n % 128 == 0, no pad / slice) ---------------------
    xa = jax.random.normal(jax.random.PRNGKey(2), (2, 128), dtype=jnp.float32) * 0.3
    outa = jax.block_until_ready(quant(xa, scale))
    refa = _ref_forward(xa, scale, bit=8, rows=4, bias_input=2, int_flag=False)
    assert outa.shape == (2, 128)
    assert jnp.allclose(outa, refa, atol=1e-6, rtol=1e-6)

    # ---- noise path (stochastic; check shape, finiteness and bound) -----------
    quant_noise = BiasQuantizerRows(bit=8, rows=4, bias_input=2,
                                    symmetric=True, int_flag=False,
                                    noise_scale=0.05)
    out_noise = jax.block_until_ready(quant_noise(x, scale, seed=123))
    assert out_noise.shape == (C,)
    assert bool(jnp.all(jnp.isfinite(out_noise)))
    # |out/scale - round(clamp(x/scale))| <= 3 * thd_pos * noise_scale * sqrt(rows)
    s_eff = scale * 2
    max_dev = 3.0 * 127 * 0.05 * math.sqrt(4) + 1e-3
    assert bool(jnp.all(jnp.abs(out_noise / s_eff - ref / s_eff) <= max_dev))

    print("KERNEL_OK")
</pallas_src>

<mosaic_0001>
module attributes {stable_mosaic.version = 11 : i64} {
  func.func @_bias_quant_kernel(%arg0: i32, %arg1: memref<1xf32, #tpu.memory_space<smem>>, %arg2: memref<1x128xf32, #tpu.memory_space<vmem>>, %arg3: memref<1x128xf32, #tpu.memory_space<vmem>>) attributes {dimension_semantics = [#tpu.dimension_semantics<parallel>], iteration_bounds = array<i64: 1>, scalar_prefetch = 0 : i64, scratch_operands = 0 : i64, tpu.core_type = #tpu.core_type<tc>, window_params = [{transform_indices = @transform_0, window_bounds = array<i64: 1>}, {transform_indices = @transform_1, window_bounds = array<i64: 1, 128>}, {transform_indices = @transform_2, window_bounds = array<i64: 1, 128>}]} {
    %c0 = arith.constant 0 : index
    %0 = memref.load %arg1[%c0] : memref<1xf32, #tpu.memory_space<smem>>
    %cst = arith.constant 2.000000e+00 : f32
    %1 = arith.mulf %0, %cst : f32
    %c0_0 = arith.constant 0 : index
    %c0_1 = arith.constant 0 : index
    %2 = vector.load %arg2[%c0_0, %c0_1] : memref<1x128xf32, #tpu.memory_space<vmem>>, vector<1x128xf32>
    %3 = vector.broadcast %1 : f32 to vector<1x128xf32>
    %4 = arith.divf %2, %3 : vector<1x128xf32>
    %cst_2 = arith.constant -5.080000e+02 : f32
    %cst_3 = arith.constant 5.080000e+02 : f32
    %5 = vector.broadcast %cst_2 : f32 to vector<1x128xf32>
    %6 = arith.maximumf %5, %4 : vector<1x128xf32>
    %7 = vector.broadcast %cst_3 : f32 to vector<1x128xf32>
    %8 = arith.minimumf %7, %6 : vector<1x128xf32>
    %9 = math.roundeven %8 : vector<1x128xf32>
    %10 = vector.broadcast %1 : f32 to vector<1x128xf32>
    %11 = arith.mulf %9, %10 : vector<1x128xf32>
    %c0_4 = arith.constant 0 : index
    %c0_5 = arith.constant 0 : index
    %12 = vector.load %arg3[%c0_4, %c0_5] : memref<1x128xf32, #tpu.memory_space<vmem>>, vector<1x128xf32>
    tpu.vector_store %arg3[%c0_4, %c0_5], %11 {strides = array<i32>} : memref<1x128xf32, #tpu.memory_space<vmem>>, vector<1x128xf32>,
    return
  }
  func.func @transform_0(%arg0: i32) -> i32 {
    %c0_i32 = arith.constant 0 : i32
    %c0_i32_0 = arith.constant 0 : i32
    return %c0_i32 : i32
  }
  func.func @transform_1(%arg0: i32) -> (i32, i32) {
    %c0_i32 = arith.constant 0 : i32
    %c0_i32_0 = arith.constant 0 : i32
    return %arg0, %c0_i32 : i32, i32
  }
  func.func @transform_2(%arg0: i32) -> (i32, i32) {
    %c0_i32 = arith.constant 0 : i32
    %c0_i32_0 = arith.constant 0 : i32
    return %arg0, %c0_i32 : i32, i32
  }
}

</mosaic_0001>

<bundles_post_ra>
// kernel: tpu_custom_call.1
= control target key start
LH: loop header
LB: loop body
LE: loop exit
PB: predicated region body
PF: predicated region fallthrough
CT: control target
= control target key end

     0   :  { %8 = vsyncpa [#allocation4], 0  ;;  %s149_s0 = inlined_call_operand.<no memory space> [shape: f32[1], index: 0, kind: input, shape index: {}]   ;;  %s150_s1 = inlined_call_operand.hbm [shape: f32[1,128], index: 1, kind: input, shape index: {}, may-alias: {1,2}]   ;;  %s151_s2 = inlined_call_operand.hbm [shape: f32[1,128], index: 2, kind: output, shape index: {}, may-alias: {1,2}]  }
   0x1   :  { %9 = vsyncpa [#allocation5], 0  ;;  %s105_s9 = smov [#allocation3]   ;;  %s57_s13 = scalar_lea.hbm %s150_s1, 16 }
   0x2   :  { %s18_s10 = sshll.u32 %s105_s9, 4  ;;  %p58_p0 = scmp.ne.s32.totalorder %s150_s1, %s57_s13  ;;  %s19_s10 = int_to_ptr.vmem [resolvable:$true] %s18_s10 }
   0x3   :  { %p61_p1 = scmp.lt.u32.totalorder %s57_s13, %s150_s1 }
   0x5   :  { %p63_p2 = pnand %p61_p1, %p58_p0 }
   0x7   :  { %66 = shalt.err (!%p63_p2)
}
   0x8   :  { %s67_s18 = scalar_lea.vmem %s19_s10, 16  ;;  %s71_s19 = scalar_lea.vmem %s19_s10, 32 }
   0x9   :  { %p68_p3 = scmp.ne.s32.totalorder %s19_s10, %s67_s18  ;;  %p72_p4 = scmp.lt.s32.totalorder %s19_s10, %s19_s10 }
   0xa   :  { %p73_p5 = scmp.lt.s32.totalorder %s71_s19, %s67_s18 }
   0xc   :  { %p74_p6 = por %p73_p5, %p72_p4 }
   0xe   :  { %p75_p7 = pnand %p74_p6, %p68_p3 }
  0x10   :  { %78 = shalt.err (!%p75_p7)
}
  0x11   :  { %21 = dma.hbm_to_vmem [thread:$0]  %s150_s1, 16, %s19_s10, [#allocation4]  }
  0x12   :  { %101 = dma.done.wait [#allocation4], 16  }
  0x13   :  { %102 = vsyncadd [#allocation4], 4294967280  ;;  %s26_s24 = smul.f32 2.0, %s149_s0  ;;  %v27_v1 = vld [vmem:[#allocation3] sm:$0x1]  ;;  %s106_s25 = smov [#allocation6]  }
  0x14   :  { %s42_s26 = sshll.u32 %s106_s25, 4  ;;  %s43_s26 = int_to_ptr.vmem [resolvable:$true] %s42_s26 }
  0x15   :  { %v28_v0 = vstv %s26_s24  ;;  %s79_s27 = scalar_lea.vmem %s43_s26, 16  ;;  %s83_s1 = scalar_lea.vmem %s43_s26, 32 }
  0x16   :  { %55 = vrcp.f32 %v28_v0  ;;  %p80_p8 = scmp.ne.s32.totalorder %s43_s26, %s79_s27  ;;  %p84_p9 = scmp.lt.s32.totalorder %s43_s26, %s43_s26 }
  0x17   :  { %p85_p10 = scmp.lt.s32.totalorder %s83_s1, %s79_s27 }
  0x19   :  { %p86_p11 = por %p85_p10, %p84_p9 }
  0x1b   :  { %p87_p12 = pnand %p86_p11, %p80_p8 }
  0x20   :  { %v56_v2 = vpop.eup %55 }
  0x21   :  { %v30_v3 = vmul.f32 %v56_v2, %v27_v1 }
  0x23   :  { %v51_v4 = vclamps-f32 %v30_v3, 508.0 }
  0x25   :  { %v52_v5 = vround.rtne.f32 %v51_v4 }
  0x27   :  { %v34_v6 = vmul.f32 %v52_v5, %v28_v0 }
  0x29   :  { %35 = vst [vmem:[#allocation6] sm:$0x1] %v34_v6 }
  0x2a   :  { %90 = shalt.err (!%p87_p12)
}
  0x2b   :  { %s91_s29 = scalar_lea.hbm %s151_s2, 16 }
  0x2c   :  { %p92_p13 = scmp.ne.s32.totalorder %s151_s2, %s91_s29  ;;  %p95_p0 = scmp.lt.u32.totalorder %s91_s29, %s151_s2 }
  0x2e   :  { %p97_p1 = pnand %p95_p0, %p92_p13 }
  0x30   :  { %100 = shalt.err (!%p97_p1)
}
  0x31   :  { %45 = dma.vmem_to_hbm [thread:$0]  %s43_s26, 16, %s151_s2, [#allocation5]  }
  0x32   :  { %103 = dma.done.wait [#allocation5], 16  }
  0x33   :  { %104 = vsyncadd [#allocation5], 4294967280 }
  0x34   :  { %49 = vsyncpa [#allocation4], 1 }
  0x35   :  { %50 = vsyncpa [#allocation5], 1 }

</bundles_post_ra>
